<compile_context>
chip_gen: v5e
topology: v5e:2x2
jax: 0.10.0
libtpu: 0.0.40
codegen_flags: <defaults>
</compile_context>

<pallas_src>
import jax
import jax.numpy as jnp
from jax.experimental import pallas as pl
from jax.experimental.pallas import tpu as pltpu

# Small shapes consistent with the module (hidden_dim=32 -> Linear(64, 1)).
BATCH = 2
SEQ_LEN = 8
HIDDEN_DIM = 32


def temporal_attention_kernel(lstm_ref, w_ref, ctx_ref, attw_ref):
    """Fused temporal-attention forward (hidden/bias path removed — it is a
    provable no-op under the row-wise softmax).

    lstm_ref : (B, T, H)  LSTM outputs
    w_ref    : (1, H)     second half of nn.Linear(2H, 1).weight (the lstm half)
    ctx_ref  : (B, H)     context output
    attw_ref : (B, T)     attention weights output
    """
    B, T, H = lstm_ref.shape

    lstm = lstm_ref[...]                          # (B, T, H)
    w_seq = w_ref[...].reshape(1, 1, H)           # (1, 1, H)

    # scores[b, t] = w_seq · lstm[b, t, :]  — kept in (B, T, 1) layout so T stays
    # on the sublane axis, matching lstm's layout for the weighted sum below.
    scores = jnp.sum(lstm * w_seq, axis=-1, keepdims=True)      # (B, T, 1)

    # Softmax over the sequence (sublane) axis. Exact divide (free at this size).
    m = jnp.max(scores, axis=1, keepdims=True)                  # (B, 1, 1)
    p = jnp.exp(scores - m)                                     # (B, T, 1)
    denom = jnp.sum(p, axis=1, keepdims=True)                   # (B, 1, 1)
    attw3 = p / denom                                           # (B, T, 1)

    # Squeeze only at the store; everything else stays sublane-major.
    attw_ref[...] = attw3.reshape(B, T)                         # (B, T)

    # context[b, :] = sum_t attw[b, t] * lstm[b, t, :]  — VPU multiply + sublane
    # reduce; no MXU, no mask construction, no (B*T, H) reshape copy.
    ctx_ref[...] = jnp.sum(attw3 * lstm, axis=1)                # (B, H)


def temporal_attention(hidden_states, lstm_output, weight, bias):
    """Mirrors TemporalAttention.forward.

    hidden_states : (B, H)   — unused: its score contribution is constant over t
    lstm_output   : (B, T, H)
    weight        : (1, 2H)  — nn.Linear(2H, 1).weight (torch out x in layout)
    bias          : (1, 1)   — unused: constant over t, cancels in the softmax
    """
    B, T, H = lstm_output.shape
    # Trace-time slice of the lstm half of the weight — the (B, T, 2H) concat and
    # the hidden/bias partial dot never exist anywhere.
    w_seq = weight[:, H:]                                        # (1, H)
    _ = (hidden_states, bias)  # provably no-ops for the forward outputs

    vmem = lambda: pl.BlockSpec(memory_space=pltpu.MemorySpace.VMEM)
    ctx, attw = pl.pallas_call(
        temporal_attention_kernel,
        out_shape=(
            jax.ShapeDtypeStruct((B, H), jnp.float32),
            jax.ShapeDtypeStruct((B, T), jnp.float32),
        ),
        in_specs=[vmem(), vmem()],
        out_specs=(vmem(), vmem()),
    )(lstm_output, w_seq)
    return ctx, attw


if __name__ == "__main__":
    key = jax.random.PRNGKey(0)
    k1, k2, k3, k4 = jax.random.split(key, 4)

    B, T, H = BATCH, SEQ_LEN, HIDDEN_DIM
    hidden_states = jax.random.normal(k1, (B, H), jnp.float32)
    lstm_output = jax.random.normal(k2, (B, T, H), jnp.float32)
    weight = 0.1 * jax.random.normal(k3, (1, 2 * H), jnp.float32)   # Linear(2H, 1).weight
    bias = 0.1 * jax.random.normal(k4, (1, 1), jnp.float32)         # Linear(2H, 1).bias

    ctx, attw = temporal_attention(hidden_states, lstm_output, weight, bias)
    jax.block_until_ready((ctx, attw))

    # Pure-JAX reference mirroring the PyTorch forward exactly (including the
    # hidden/bias path, to verify the shift-invariance simplification).
    combined = jnp.concatenate(
        [jnp.broadcast_to(hidden_states[:, None, :], (B, T, H)), lstm_output],
        axis=-1)                                                    # (B, T, 2H)
    scores_ref = jnp.einsum("btd,d->bt", combined, weight[0]) + bias[0, 0]
    attw_ref = jax.nn.softmax(scores_ref, axis=1)                   # (B, T)
    ctx_ref = jnp.einsum("bt,bth->bh", attw_ref, lstm_output)       # (B, H)

    assert ctx.shape == (B, H)
    assert attw.shape == (B, T)
    assert bool(jnp.all(jnp.isfinite(ctx))) and bool(jnp.all(jnp.isfinite(attw)))
    assert bool(jnp.allclose(attw, attw_ref, atol=1e-4, rtol=1e-4))
    assert bool(jnp.allclose(ctx, ctx_ref, atol=1e-4, rtol=1e-4))
    print("KERNEL_OK")
</pallas_src>

<mosaic_0001>
module attributes {stable_mosaic.version = 11 : i64} {
  func.func @temporal_attention_kernel(%arg0: memref<2x8x32xf32, #tpu.memory_space<vmem>>, %arg1: memref<1x32xf32, #tpu.memory_space<vmem>>, %arg2: memref<2x32xf32, #tpu.memory_space<vmem>>, %arg3: memref<2x8xf32, #tpu.memory_space<vmem>>) attributes {dimension_semantics = [], scalar_prefetch = 0 : i64, scratch_operands = 0 : i64, tpu.core_type = #tpu.core_type<tc>} {
    %c0 = arith.constant 0 : index
    %c0_0 = arith.constant 0 : index
    %c0_1 = arith.constant 0 : index
    %0 = vector.load %arg0[%c0, %c0_0, %c0_1] : memref<2x8x32xf32, #tpu.memory_space<vmem>>, vector<2x8x32xf32>
    %c0_2 = arith.constant 0 : index
    %c0_3 = arith.constant 0 : index
    %1 = vector.load %arg1[%c0_2, %c0_3] : memref<1x32xf32, #tpu.memory_space<vmem>>, vector<1x32xf32>
    %2 = vector.shape_cast %1 : vector<1x32xf32> to vector<1x1x32xf32>
    %3 = vector.broadcast %2 : vector<1x1x32xf32> to vector<2x8x32xf32>
    %4 = arith.mulf %0, %3 : vector<2x8x32xf32>
    %cst = arith.constant dense<0.000000e+00> : vector<2x8xf32>
    %5 = vector.multi_reduction <add>, %4, %cst [2] : vector<2x8x32xf32> to vector<2x8xf32>
    %6 = vector.shape_cast %5 : vector<2x8xf32> to vector<2x8x1xf32>
    %cst_4 = arith.constant dense<0xFF800000> : vector<2x1xf32>
    %7 = vector.multi_reduction <maximumf>, %6, %cst_4 [1] : vector<2x8x1xf32> to vector<2x1xf32>
    %8 = vector.shape_cast %7 : vector<2x1xf32> to vector<2x1x1xf32>
    %9 = vector.broadcast %8 : vector<2x1x1xf32> to vector<2x8x1xf32>
    %10 = arith.subf %6, %9 : vector<2x8x1xf32>
    %11 = math.exp %10 : vector<2x8x1xf32>
    %cst_5 = arith.constant dense<0.000000e+00> : vector<2x1xf32>
    %12 = vector.multi_reduction <add>, %11, %cst_5 [1] : vector<2x8x1xf32> to vector<2x1xf32>
    %13 = vector.shape_cast %12 : vector<2x1xf32> to vector<2x1x1xf32>
    %14 = vector.broadcast %13 : vector<2x1x1xf32> to vector<2x8x1xf32>
    %15 = arith.divf %11, %14 : vector<2x8x1xf32>
    %16 = vector.shape_cast %15 : vector<2x8x1xf32> to vector<2x8xf32>
    %c0_6 = arith.constant 0 : index
    %c0_7 = arith.constant 0 : index
    %17 = vector.load %arg3[%c0_6, %c0_7] : memref<2x8xf32, #tpu.memory_space<vmem>>, vector<2x8xf32>
    tpu.vector_store %arg3[%c0_6, %c0_7], %16 {strides = array<i32>} : memref<2x8xf32, #tpu.memory_space<vmem>>, vector<2x8xf32>,
    %18 = vector.broadcast %15 : vector<2x8x1xf32> to vector<2x8x32xf32>
    %19 = arith.mulf %18, %0 : vector<2x8x32xf32>
    %cst_8 = arith.constant dense<0.000000e+00> : vector<2x32xf32>
    %20 = vector.multi_reduction <add>, %19, %cst_8 [1] : vector<2x8x32xf32> to vector<2x32xf32>
    %c0_9 = arith.constant 0 : index
    %c0_10 = arith.constant 0 : index
    %21 = vector.load %arg2[%c0_9, %c0_10] : memref<2x32xf32, #tpu.memory_space<vmem>>, vector<2x32xf32>
    tpu.vector_store %arg2[%c0_9, %c0_10], %20 {strides = array<i32>} : memref<2x32xf32, #tpu.memory_space<vmem>>, vector<2x32xf32>,
    return
  }
}

</mosaic_0001>

<bundles_post_ra>
// kernel: tpu_custom_call.1
= control target key start
LH: loop header
LB: loop body
LE: loop exit
PB: predicated region body
PF: predicated region fallthrough
CT: control target
= control target key end

     0   :  { %9 = vsyncpa [#allocation3], 0  ;;  %s358_s0 = inlined_call_operand.hbm [shape: f32[2,8,32], index: 0, kind: input, shape index: {}]   ;;  %s359_s1 = inlined_call_operand.hbm [shape: f32[1,32], index: 1, kind: input, shape index: {}]   ;;  %s360_s2 = inlined_call_operand.hbm [shape: f32[2,32], index: 2, kind: output, shape index: {0}]   ;;  %s361_s3 = inlined_call_operand.hbm [shape: f32[2,8], index: 3, kind: output, shape index: {1}]  }
   0x1   :  { %10 = vsyncpa [#allocation6], 0 }
   0x2   :  { %11 = vsyncpa [#allocation4], 0 }
   0x3   :  { %12 = vsyncpa [#allocation9], 0  ;;  %s17_s14 = sshll.u32 %s358_s0, 4  ;;  %s306_s15 = smov [#allocation2]   ;;  %s18_s14 = int_to_ptr.hbm [resolvable:$true] %s17_s14 }
   0x4   :  { %s19_s16 = sshll.u32 %s306_s15, 4  ;;  %s31_s19 = sshll.u32 %s359_s1, 4  ;;  %s20_s16 = int_to_ptr.vmem [resolvable:$true] %s19_s16  ;;  %s32_s19 = int_to_ptr.hbm [resolvable:$true] %s31_s19 }
   0x5   :  { %s307_s20 = smov 128   ;;  %s308_s21 = smov 8  }
   0x6   :  { %25 = dma.hbm_to_vmem [thread:$0]  %s18_s14, 256, %s20_s16, [#allocation3], %s307_s20, %s307_s20, %s308_s21  }
   0x7   :  { %s309_s22 = smov [#allocation5]  }
   0x8   :  { %s33_s23 = sshll.u32 %s309_s22, 4  ;;  %s34_s23 = int_to_ptr.vmem [resolvable:$true] %s33_s23 }
   0x9   :  { %36 = dma.hbm_to_vmem [thread:$0]  %s32_s19, 16, %s34_s23, [#allocation6]  }
   0xa   :  { %298 = dma.done.wait [#allocation3], 256  }
   0xb   :  { %299 = vsyncadd [#allocation3], 4294967040 }
   0xc   :  { %300 = dma.done.wait [#allocation6], 16  }
   0xd   :  { %301 = vsyncadd [#allocation6], 4294967280  ;;  %v338_v0 = vld [vmem:[#allocation2] sm:$0xff]  ;;  %v193_v1 = vld [vmem:[#allocation5] ss:$0 sm:$0xff]  ;;  %vm53_vm0 = vcmask 261120   ;;  %v122_v54 = vlaneseq }
   0xe   :  { %v51_v2 = vmul.f32 %v193_v1, %v338_v0  ;;  %v341_v3 = vld [vmem:[#allocation2 + $0x8] sm:$0xff]  ;;  %s310_s0 = smov [#allocation8]   ;;  %s171_s26 = sshll.u32 %s361_s3, 4  ;;  %vm126_vm9 = vcmask 1041409   ;;  %vm129_vm10 = vcmask 58368   ;;  %vm151_vm11 = vcmask 254976   ;;  %s172_s26 = int_to_ptr.hbm [resolvable:$true] %s171_s26 }
   0xf   :  { %v52_v5 = vmul.f32 %v193_v1, %v341_v3  ;;  %v123_v63 = vand.u32 127, %v122_v54  ;;  %s169_s1 = sshll.u32 %s310_s0, 4  ;;  %s311_s3 = smov [#allocation7]   ;;  %s170_s1 = int_to_ptr.vmem [resolvable:$true] %s169_s1 }
  0x10   :  { %v54_v4 = vsel %vm53_vm0, %v51_v2, 0.0  ;;  %s158_s27 = sshll.u32 %s311_s3, 4  ;;  %s160_s30 = sshll.u32 %s360_s2, 4  ;;  %s159_s27 = int_to_ptr.vmem [resolvable:$true] %s158_s27  ;;  %s161_s30 = int_to_ptr.hbm [resolvable:$true] %s160_s30 }
  0x11   :  { %55 = vadd.xlane.f32.xlu0 %v54_v4  ;;  %v57_v6 = vsel %vm53_vm0, %v52_v5, 0.0 }
  0x19   :  { %58 = vadd.xlane.f32.xlu0 %v57_v6 }
  0x84   :  { %v56_v7 = vpop.xlane.xlu0 %55 }
  0x85   :  { %v60_v8 = vrot.slane %v56_v7, 4 }
  0x87   :  { %v61_v9 = vmax.f32 %v56_v7, %v60_v8 }
  0x89   :  { %v62_v10 = vrot.slane %v61_v9, 2 }
  0x8b   :  { %v63_v11 = vmax.f32 %v61_v9, %v62_v10 }
  0x8c   :  { %v59_v12 = vpop.xlane.xlu0 %58 }
  0x8d   :  { %v64_v13 = vrot.slane %v63_v11, 1  ;;  %v66_v14 = vrot.slane %v59_v12, 4 }
  0x8f   :  { %v65_v15 = vmax.f32 %v63_v11, %v64_v13  ;;  %v67_v16 = vmax.f32 %v59_v12, %v66_v14 }
  0x91   :  { %v72_v17 = vsub.f32 %v56_v7, %v65_v15  ;;  %v68_v18 = vrot.slane %v67_v16, 2 }
  0x93   :  { %v74_v19 = vmul.f32 1.442695, %v72_v17  ;;  %v69_v20 = vmax.f32 %v67_v16, %v68_v18 }
  0x95   :  { %194 = vpow2.f32 %v74_v19  ;;  %v70_v21 = vrot.slane %v69_v20, 1 }
  0x97   :  { %v71_v22 = vmax.f32 %v69_v20, %v70_v21 }
  0x99   :  { %v73_v23 = vsub.f32 %v59_v12, %v71_v22 }
  0x9b   :  { %v195_v24 = vpop.eup %194  ;;  %v76_v25 = vmul.f32 1.442695, %v73_v23 }
  0x9c   :  { %v78_v26 = vrot.slane %v195_v24, 4 }
  0x9d   :  { %196 = vpow2.f32 %v76_v25 }
  0x9e   :  { %v79_v27 = vadd.f32 %v195_v24, %v78_v26 }
  0xa0   :  { %v80_v28 = vrot.slane %v79_v27, 2 }
  0xa2   :  { %v81_v29 = vadd.f32 %v80_v28, %v79_v27 }
  0xa3   :  { %v197_v30 = vpop.eup %196 }
  0xa4   :  { %v82_v31 = vrot.slane %v81_v29, 1  ;;  %v84_v32 = vrot.slane %v197_v30, 4 }
  0xa6   :  { %v83_v33 = vadd.f32 %v82_v31, %v81_v29  ;;  %v85_v34 = vadd.f32 %v197_v30, %v84_v32 }
  0xa8   :  { %198 = vrcp.f32 %v83_v33  ;;  %v86_v35 = vrot.slane %v85_v34, 2  ;;  %v101_v42 = vand.u32 2147483648, %v83_v33  ;;  %v99_v44 = vand.u32 2147483647, %v83_v33 }
  0xa9   :  { %vm95_vm2 = vweird.f32 %v83_v33 }
  0xaa   :  { %v87_v36 = vadd.f32 %v86_v35, %v85_v34  ;;  %v102_v47 = vor.u32 1.1754944e-38, %v101_v42  ;;  %vm100_vm4 = vcmp.eq.f32.partialorder %v99_v44, 8.507059e+37 }
  0xac   :  { %v88_v37 = vrot.slane %v87_v36, 1 }
  0xae   :  { %v199_v38 = vpop.eup %198  ;;  %v89_v39 = vadd.f32 %v88_v37, %v87_v36 }
  0xaf   :  { %v91_v40 = vmul.f32 %v199_v38, %v83_v33  ;;  %vm96_vm1 = vweird.f32 %v199_v38 }
  0xb0   :  { %200 = vrcp.f32 %v89_v39  ;;  %vm97_vm3 = vmor %vm95_vm2, %vm96_vm1  ;;  %v116_v53 = vand.u32 2147483648, %v89_v39  ;;  %v114_v56 = vand.u32 2147483647, %v89_v39  ;;  %vm110_vm6 = vweird.f32 %v89_v39 }
  0xb1   :  { %v92_v41 = vsub.f32 1.0, %v91_v40 }
  0xb2   :  { %v117_v60 = vor.u32 1.1754944e-38, %v116_v53  ;;  %vm115_vm8 = vcmp.eq.f32.partialorder %v114_v56, 8.507059e+37 }
  0xb3   :  { %v93_v43 = vmul.f32 %v199_v38, %v92_v41 }
  0xb5   :  { %v94_v45 = vadd.f32 %v199_v38, %v93_v43 }
  0xb6   :  { %v201_v46 = vpop.eup %200 }
  0xb7   :  { %v106_v48 = vmul.f32 %v201_v46, %v89_v39  ;;  %v98_v49 = vsel %vm97_vm3, %v199_v38, %v94_v45  ;;  %vm111_vm5 = vweird.f32 %v201_v46 }
  0xb8   :  { %v103_v50 = vsel %vm100_vm4, %v102_v47, %v98_v49  ;;  %vm112_vm7 = vmor %vm110_vm6, %vm111_vm5 }
  0xb9   :  { %v107_v51 = vsub.f32 1.0, %v106_v48  ;;  %v104_v52 = vmul.f32 %v195_v24, %v103_v50 }
  0xbb   :  { %v108_v55 = vmul.f32 %v201_v46, %v107_v51  ;;  %v131_v57 = vmul.f32 %v104_v52, %v338_v0  ;;  %v124_v5 = vperm.slane %v104_v52, %v123_v63 }
  0xbd   :  { %v109_v58 = vadd.f32 %v201_v46, %v108_v55  ;;  %v133_v59 = vsel %vm53_vm0, %v131_v57, 0.0 }
  0xbe   :  { %v134_v61 = vrot.slane %v133_v59, 4 }
  0xbf   :  { %v113_v62 = vsel %vm112_vm7, %v201_v46, %v109_v58 }
  0xc0   :  { %v118_v1 = vsel %vm115_vm8, %v117_v60, %v113_v62  ;;  %v135_v2 = vadd.f32 %v134_v61, %v133_v59 }
  0xc1   :  { %v119_v4 = vmul.f32 %v197_v30, %v118_v1 }
  0xc2   :  { %v136_v7 = vrot.slane %v135_v2, 2 }
  0xc3   :  { %v132_v0 = vmul.f32 %v119_v4, %v341_v3  ;;  %v125_v6 = vperm.slane %v119_v4, %v123_v63 }
  0xc4   :  { %v137_v11 = vadd.f32 %v136_v7, %v135_v2 }
  0xc5   :  { %v140_v8 = vsel %vm53_vm0, %v132_v0, 0.0  ;;  %v127_v9 = vsel %vm126_vm9, %v125_v6, %v124_v5 }
  0xc6   :  { %v141_v10 = vrot.slane %v140_v8, 4  ;;  %130 = vst.msk [vmem:[#allocation8] sm:$0x3] %vm129_vm10, %v127_v9  ;;  %v138_v14 = vrot.slane %v137_v11, 1 }
  0xc7   :  { %174 = dma.vmem_to_hbm [thread:$0]  %s170_s1, 32, %s172_s26, [#allocation9]  }
  0xc8   :  { %v142_v12 = vadd.f32 %v141_v10, %v140_v8  ;;  %v139_v3 = vadd.f32 %v138_v14, %v137_v11 }
  0xca   :  { %v143_v13 = vrot.slane %v142_v12, 2 }
  0xcc   :  { %v144_v15 = vadd.f32 %v143_v13, %v142_v12 }
  0xce   :  { %v145_v16 = vrot.slane %v144_v15, 1 }
  0xd0   :  { %v146_v17 = vadd.f32 %v145_v16, %v144_v15 }
  0xd2   :  { %v149_v18 = vsel %vm126_vm9, %v146_v17, %v139_v3 }
  0xd3   :  { %152 = vst.msk [vmem:[#allocation7] sm:$0x3] %vm151_vm11, %v149_v18 }
  0xd4   :  { %163 = dma.vmem_to_hbm [thread:$0]  %s159_s27, 32, %s161_s30, [#allocation4]  }
  0xd5   :  { %302 = dma.done.wait [#allocation4], 32  }
  0xd6   :  { %303 = vsyncadd [#allocation4], 4294967264 }
  0xd7   :  { %304 = dma.done.wait [#allocation9], 32  }
  0xd8   :  { %305 = vsyncadd [#allocation9], 4294967264 }
  0xd9   :  { %183 = vsyncpa [#allocation3], 1 }
  0xda   :  { %184 = vsyncpa [#allocation6], 1 }
  0xdb   :  { %185 = vsyncpa [#allocation4], 1 }
  0xdc   :  { %186 = vsyncpa [#allocation9], 1 }

</bundles_post_ra>
